<compile_context>
chip_gen: v7x
topology: tpu7x:2x2x1
jax: 0.10.0
libtpu: 0.0.40
codegen_flags: <defaults>
</compile_context>

<pallas_src>
import functools

import jax
import jax.numpy as jnp
from jax.experimental import pallas as pl
from jax.experimental.pallas import tpu as pltpu

TM = 256  # batch tile for the gridded (large-batch / megacore) path


def _pad_hidden(d):
    """Pad a hidden feature dim: min 128; multiples of 256 above 128 (v6e/v7x MXU)."""
    if d <= 128:
        return 128
    return ((d + 255) // 256) * 256


def _fused_mlp_kernel(x_ref, *refs, n_layers):
    """Fused MLP.

    x_ref:  (M, D0)  unpadded input activations (f32)
    refs:   w_1, b_1, ..., w_L, b_L, out_ref
            w_i: (Din_eff, Dout_eff) bf16, pre-transposed -> contract on K directly
            b_i: (1, Dout_eff) f32
            out_ref: (M, D_out) f32  (exact, unpadded)
    Everything is VMEM-resident; intermediates never touch HBM.
    """
    out_ref = refs[-1]
    h = x_ref[...].astype(jnp.bfloat16)
    for i in range(n_layers):
        w = refs[2 * i][...]        # (K, N) bf16
        b = refs[2 * i + 1][...]    # (1, N) f32
        acc = jnp.dot(h, w, preferred_element_type=jnp.float32) + b
        if i < n_layers - 1:
            # Dropout(0.5) in eval mode is the identity, then ReLU.
            h = jnp.maximum(acc, 0.0).astype(jnp.bfloat16)
        else:
            out_ref[...] = jax.nn.sigmoid(acc).astype(out_ref.dtype)


class FullyConnectedNetPallas:
    """JAX/Pallas port of the PyTorch FullyConnectedNet (eval-mode dropout)."""

    def __init__(self, layer_sizes, batch_size, key):
        self.layer_sizes = list(layer_sizes)
        self.batch = int(batch_size)
        n_layers = len(self.layer_sizes) - 1

        # Kernel-side feature dims: input & output exact, hidden dims padded.
        dims_eff = ([self.layer_sizes[0]]
                    + [_pad_hidden(d) for d in self.layer_sizes[1:-1]]
                    + [self.layer_sizes[-1]])
        self.dims_eff = dims_eff

        # --- parameter init (matches PyTorch module semantics) -------------
        raw_params = []     # (w_bf16 [out,in], b_f32 [out]) for the JAX reference
        padded_params = []  # kernel inputs: w^T (K_eff,N_eff) bf16, bias (1,N_eff) f32
        for i, (in_size, out_size) in enumerate(
                zip(self.layer_sizes[:-1], self.layer_sizes[1:])):
            key, kw, kb = jax.random.split(key, 3)
            # xavier_normal_: std = sqrt(2 / (fan_in + fan_out))
            std = (2.0 / (in_size + out_size)) ** 0.5
            w = std * jax.random.normal(kw, (out_size, in_size), dtype=jnp.float32)
            # PyTorch Linear default bias init: U(-1/sqrt(fan_in), 1/sqrt(fan_in))
            bound = 1.0 / (in_size ** 0.5)
            b = jax.random.uniform(kb, (out_size,), minval=-bound, maxval=bound,
                                   dtype=jnp.float32)
            w_bf16 = w.astype(jnp.bfloat16)
            raw_params.append((w_bf16, b))

            k_eff, n_eff = dims_eff[i], dims_eff[i + 1]
            # Pre-transpose to (K, N), zero-pad only the padded hidden region.
            w_t = (jnp.zeros((k_eff, n_eff), jnp.bfloat16)
                   .at[:in_size, :out_size].set(w_bf16.T))
            b_p = jnp.zeros((1, n_eff), jnp.float32).at[0, :out_size].set(b)
            padded_params.append(w_t)
            padded_params.append(b_p)

        self.raw_params = raw_params
        self.padded_params = tuple(padded_params)

        # --- build the single fused pallas_call -----------------------------
        d_in, d_out = self.layer_sizes[0], self.layer_sizes[-1]
        use_grid = (self.batch % TM == 0) and (self.batch // TM >= 2)

        if use_grid:
            # Batch grid: tiles of TM rows; weights/biases map to block (0,0)
            # every step -> stay VMEM-resident (no re-DMA across iterations).
            in_specs = [pl.BlockSpec((TM, d_in), lambda i: (i, 0))]
            for li in range(n_layers):
                w_shape = self.padded_params[2 * li].shape
                b_shape = self.padded_params[2 * li + 1].shape
                in_specs.append(pl.BlockSpec(w_shape, lambda i: (0, 0)))
                in_specs.append(pl.BlockSpec(b_shape, lambda i: (0, 0)))
            out_specs = pl.BlockSpec((TM, d_out), lambda i: (i, 0))
            grid = (self.batch // TM,)
            dim_semantics = ("parallel",)   # megacore: both TCs on v7x
        else:
            # Gridless: whole arrays resident in VMEM, no pipelining machinery.
            vmem_spec = pl.BlockSpec(memory_space=pltpu.MemorySpace.VMEM)
            in_specs = [vmem_spec] * (1 + 2 * n_layers)
            out_specs = vmem_spec
            grid = None
            dim_semantics = None

        # VMEM budget: weights + biases + per-tile activations (+ slack).
        param_bytes = sum(int(p.size) * p.dtype.itemsize for p in self.padded_params)
        tile_m = TM if use_grid else self.batch
        act_bytes = 4 * tile_m * max(dims_eff) * 3
        io_bytes = 4 * tile_m * (d_in + d_out) * 2      # double-buffered in/out blocks
        vmem_est = param_bytes + act_bytes + io_bytes

        cp_kwargs = {}
        if dim_semantics is not None:
            cp_kwargs["dimension_semantics"] = dim_semantics
        if vmem_est > 16 * 2**20:   # v5e default scoped VMEM limit
            cp_kwargs["vmem_limit_bytes"] = int(min(vmem_est * 3 // 2, 56 * 2**20))
        compiler_params = pltpu.CompilerParams(**cp_kwargs) if cp_kwargs else None

        call_kwargs = dict(
            out_shape=jax.ShapeDtypeStruct((self.batch, d_out), jnp.float32),
            in_specs=in_specs,
            out_specs=out_specs,
        )
        if grid is not None:
            call_kwargs["grid"] = grid
        if compiler_params is not None:
            call_kwargs["compiler_params"] = compiler_params

        fused_call = pl.pallas_call(
            functools.partial(_fused_mlp_kernel, n_layers=n_layers), **call_kwargs)

        def forward(x, params):
            # Single XLA op: no wrapper-side pad, no post-slice.
            return fused_call(x.astype(jnp.float32), *params)

        self._forward = jax.jit(forward)

    def __call__(self, x):
        return self._forward(x, self.padded_params)


def _reference(x, raw_params):
    """Pure-JAX reference, bf16 weights/activations, f32 accumulation."""
    h = x.astype(jnp.float32)
    n = len(raw_params)
    for i, (w_bf16, b) in enumerate(raw_params):
        h = jnp.dot(h.astype(jnp.bfloat16), w_bf16.T,
                    preferred_element_type=jnp.float32) + b
        if i < n - 1:
            h = jnp.maximum(h, 0.0)
        else:
            h = jax.nn.sigmoid(h)
    return h


if __name__ == "__main__":
    key = jax.random.PRNGKey(0)
    layer_sizes = [32, 64, 32, 8]  # small MLP consistent with the module

    # ---- small-batch path (gridless, fully VMEM-resident) ------------------
    key, k_model, k_x = jax.random.split(key, 3)
    batch = 8
    model = FullyConnectedNetPallas(layer_sizes, batch, k_model)
    x = jax.random.normal(k_x, (batch, layer_sizes[0]), dtype=jnp.float32)
    out = jax.block_until_ready(model(x))
    ref = _reference(x, model.raw_params)
    assert out.shape == (batch, layer_sizes[-1])
    assert jnp.allclose(out, ref, atol=2e-3, rtol=2e-3), float(jnp.max(jnp.abs(out - ref)))

    # ---- large-batch path (batch grid, "parallel" -> both TCs on v7x) ------
    key, k_model2, k_x2 = jax.random.split(key, 3)
    batch2 = 512
    model2 = FullyConnectedNetPallas(layer_sizes, batch2, k_model2)
    x2 = jax.random.normal(k_x2, (batch2, layer_sizes[0]), dtype=jnp.float32)
    out2 = jax.block_until_ready(model2(x2))
    ref2 = _reference(x2, model2.raw_params)
    assert out2.shape == (batch2, layer_sizes[-1])
    assert jnp.allclose(out2, ref2, atol=2e-3, rtol=2e-3), float(jnp.max(jnp.abs(out2 - ref2)))

    print("KERNEL_OK")
</pallas_src>

<mosaic_0001>
module attributes {stable_mosaic.version = 11 : i64} {
  func.func @_fused_mlp_kernel(%arg0: memref<8x32xf32, #tpu.memory_space<vmem>>, %arg1: memref<32x128xbf16, #tpu.memory_space<vmem>>, %arg2: memref<1x128xf32, #tpu.memory_space<vmem>>, %arg3: memref<128x128xbf16, #tpu.memory_space<vmem>>, %arg4: memref<1x128xf32, #tpu.memory_space<vmem>>, %arg5: memref<128x8xbf16, #tpu.memory_space<vmem>>, %arg6: memref<1x8xf32, #tpu.memory_space<vmem>>, %arg7: memref<8x8xf32, #tpu.memory_space<vmem>>) attributes {dimension_semantics = [], scalar_prefetch = 0 : i64, scratch_operands = 0 : i64, tpu.core_type = #tpu.core_type<tc>} {
    %c0 = arith.constant 0 : index
    %c0_0 = arith.constant 0 : index
    %0 = vector.load %arg0[%c0, %c0_0] : memref<8x32xf32, #tpu.memory_space<vmem>>, vector<8x32xf32>
    %1 = arith.truncf %0 : vector<8x32xf32> to vector<8x32xbf16>
    %c0_1 = arith.constant 0 : index
    %c0_2 = arith.constant 0 : index
    %2 = vector.load %arg1[%c0_1, %c0_2] : memref<32x128xbf16, #tpu.memory_space<vmem>>, vector<32x128xbf16>
    %c0_3 = arith.constant 0 : index
    %c0_4 = arith.constant 0 : index
    %3 = vector.load %arg2[%c0_3, %c0_4] : memref<1x128xf32, #tpu.memory_space<vmem>>, vector<1x128xf32>
    %cst = arith.constant dense<0.000000e+00> : vector<8x128xf32>
    %4 = tpu.matmul %1, %2, %cst {dimension_numbers = #tpu.dot_dimension_numbers<[1], [0], [0], [1], [0, 0, 1, 1], [], []>} : vector<8x32xbf16>, vector<32x128xbf16>, vector<8x128xf32> -> vector<8x128xf32>
    %5 = vector.broadcast %3 : vector<1x128xf32> to vector<8x128xf32>
    %6 = arith.addf %4, %5 : vector<8x128xf32>
    %cst_5 = arith.constant 0.000000e+00 : f32
    %7 = vector.broadcast %cst_5 : f32 to vector<8x128xf32>
    %8 = arith.maximumf %6, %7 : vector<8x128xf32>
    %9 = arith.truncf %8 : vector<8x128xf32> to vector<8x128xbf16>
    %c0_6 = arith.constant 0 : index
    %c0_7 = arith.constant 0 : index
    %10 = vector.load %arg3[%c0_6, %c0_7] : memref<128x128xbf16, #tpu.memory_space<vmem>>, vector<128x128xbf16>
    %c0_8 = arith.constant 0 : index
    %c0_9 = arith.constant 0 : index
    %11 = vector.load %arg4[%c0_8, %c0_9] : memref<1x128xf32, #tpu.memory_space<vmem>>, vector<1x128xf32>
    %cst_10 = arith.constant dense<0.000000e+00> : vector<8x128xf32>
    %12 = tpu.matmul %9, %10, %cst_10 {dimension_numbers = #tpu.dot_dimension_numbers<[1], [0], [0], [1], [0, 0, 1, 1], [], []>} : vector<8x128xbf16>, vector<128x128xbf16>, vector<8x128xf32> -> vector<8x128xf32>
    %13 = vector.broadcast %11 : vector<1x128xf32> to vector<8x128xf32>
    %14 = arith.addf %12, %13 : vector<8x128xf32>
    %cst_11 = arith.constant 0.000000e+00 : f32
    %15 = vector.broadcast %cst_11 : f32 to vector<8x128xf32>
    %16 = arith.maximumf %14, %15 : vector<8x128xf32>
    %17 = arith.truncf %16 : vector<8x128xf32> to vector<8x128xbf16>
    %c0_12 = arith.constant 0 : index
    %c0_13 = arith.constant 0 : index
    %18 = vector.load %arg5[%c0_12, %c0_13] : memref<128x8xbf16, #tpu.memory_space<vmem>>, vector<128x8xbf16>
    %c0_14 = arith.constant 0 : index
    %c0_15 = arith.constant 0 : index
    %19 = vector.load %arg6[%c0_14, %c0_15] : memref<1x8xf32, #tpu.memory_space<vmem>>, vector<1x8xf32>
    %cst_16 = arith.constant dense<0.000000e+00> : vector<8x8xf32>
    %20 = tpu.matmul %17, %18, %cst_16 {dimension_numbers = #tpu.dot_dimension_numbers<[1], [0], [0], [1], [0, 0, 1, 1], [], []>} : vector<8x128xbf16>, vector<128x8xbf16>, vector<8x8xf32> -> vector<8x8xf32>
    %21 = vector.broadcast %19 : vector<1x8xf32> to vector<8x8xf32>
    %22 = arith.addf %20, %21 : vector<8x8xf32>
    %23 = arith.negf %22 : vector<8x8xf32>
    %24 = math.exp %23 : vector<8x8xf32>
    %cst_17 = arith.constant 1.000000e+00 : f32
    %25 = vector.broadcast %cst_17 : f32 to vector<8x8xf32>
    %26 = arith.addf %25, %24 : vector<8x8xf32>
    %27 = arith.divf %25, %26 : vector<8x8xf32>
    %c0_18 = arith.constant 0 : index
    %c0_19 = arith.constant 0 : index
    %28 = vector.load %arg7[%c0_18, %c0_19] : memref<8x8xf32, #tpu.memory_space<vmem>>, vector<8x8xf32>
    tpu.vector_store %arg7[%c0_18, %c0_19], %27 {strides = array<i32>} : memref<8x8xf32, #tpu.memory_space<vmem>>, vector<8x8xf32>,
    return
  }
}

</mosaic_0001>

<bundles_post_ra>
// kernel: forward.1
= control target key start
LH: loop header
LB: loop body
LE: loop exit
PB: predicated region body
PF: predicated region fallthrough
CT: control target
= control target key end

     0   :  { %12 = vsyncpa [#allocation3], 0  ;;  %s682_s0 = inlined_call_operand.vmem [shape: f32[8,32], index: 0, kind: input, shape index: {}]   ;;  %s683_s1 = inlined_call_operand.hbm [shape: bf16[32,128], index: 1, kind: input, shape index: {}]   ;;  %s684_s2 = inlined_call_operand.vmem [shape: f32[1,128], index: 2, kind: input, shape index: {}]   ;;  %s685_s3 = inlined_call_operand.vmem [shape: bf16[128,128], index: 3, kind: input, shape index: {}]   ;;  %s686_s4 = inlined_call_operand.vmem [shape: f32[1,128], index: 4, kind: input, shape index: {}]   ;;  %s687_s5 = inlined_call_operand.vmem [shape: bf16[128,8], index: 5, kind: input, shape index: {}]   ;;  %s688_s6 = inlined_call_operand.vmem [shape: f32[1,8], index: 6, kind: input, shape index: {}]   ;;  %s689_s7 = inlined_call_operand.hbm [shape: f32[8,8], index: 7, kind: output, shape index: {}]  }
   0x1   :  { %13 = vsyncpa [#allocation4], 0  ;;  %s528_s24 = smov [#allocation2]   ;;  %s480_s28 = scalar_lea.hbm %s683_s1, 256 }
   0x2   :  { %s21_s25 = sshll.u32 %s528_s24, 4  ;;  %p481_p0 = scmp.ne.s32.totalorder %s683_s1, %s480_s28  ;;  %s22_s25 = int_to_ptr.vmem [resolvable:$true] %s21_s25 }
   0x3   :  { %p484_p1 = scmp.lt.u32.totalorder %s480_s28, %s683_s1 }
   0x5   :  { %p486_p2 = pnand %p484_p1, %p481_p0 }
   0x7   :  { %489 = shalt.err (!%p486_p2)
}
   0x8   :  { %s490_s10 = scalar_lea.vmem %s22_s25, 256  ;;  %p495_p4 = scmp.lt.s32.totalorder %s22_s25, %s22_s25 }
   0x9   :  { %p491_p3 = scmp.ne.s32.totalorder %s22_s25, %s490_s10  ;;  %p496_p5 = scmp.lt.s32.totalorder %s490_s10, %s490_s10 }
   0xb   :  { %p497_p6 = por %p496_p5, %p495_p4 }
   0xd   :  { %p498_p7 = pnand %p497_p6, %p491_p3 }
   0xf   :  { %501 = shalt.err (!%p498_p7)
}
  0x10   :  { %s529_s11 = smov 64   ;;  %s530_s12 = smov 4  }
  0x11   :  { %27 = dma.hbm_to_vmem [thread:$0]  %s683_s1, 256, %s22_s25, [#allocation3], %s529_s11, %s529_s11, %s530_s12  }
  0x12   :  { %524 = dma.done.wait [#allocation3], 256  }
  0x13   :  { %525 = vsyncadd [#allocation3], 4294967040  ;;  %v531_v0 = vmov 0.0   ;;  %vm532_vm0 = vmmov 0   ;;  %v458_v1 = vld [vmem:[#allocation2] sm:$0xff]   ;;  %v459_v2 = vld [vmem:[#allocation2 + $0x8] sm:$0xff]  }
  0x14   :  { %404 = vmatprep.subr.bf16.mxu0 %v531_v0  ;;  %408 = vmatprep.mubr.msk.bf16.mxu0 %vm532_vm0, %v531_v0  ;;  %v42_v3 = vld [vmem:[%s682_s0] sm:$0xff]  ;;  %v461_v6 = vld [vmem:[%s685_s3 + $0x8] sm:$0xff]   ;;  %vm67_vm1 = vcmask 261120   ;;  %v462_v7 = vld [vmem:[%s685_s3 + $0x10] sm:$0xff]   ;;  %vm343_vm2 = vcmask 64512  }
  0x15   :  { %412 = vmatprep.subr.bf16.mxu1 %v531_v0  ;;  %428 = vmatprep.mubr.msk.bf16.mxu1 %vm532_vm0, %v531_v0  ;;  %v460_v4 = vld [vmem:[%s685_s3] sm:$0xff]   ;;  %v43_v5 = vpack.c.bf16 %v42_v3, %v42_v3  ;;  %v463_v8 = vld [vmem:[%s685_s3 + $0x18] sm:$0xff]   ;;  %v465_v10 = vld [vmem:[%s685_s3 + $0x28] sm:$0xff]  }
  0x16   :  { %405 = vmatpush3.bf16.msra.mxu0 %v458_v1  ;;  %413 = vmatpush3.bf16.msra.mxu1 %v460_v4  ;;  %v464_v9 = vld [vmem:[%s685_s3 + $0x20] sm:$0xff]   ;;  %v466_v11 = vld [vmem:[%s685_s3 + $0x30] sm:$0xff]   ;;  %v467_v12 = vld [vmem:[%s685_s3 + $0x38] sm:$0xff]  }
  0x17   :  { %406 = vmatprep.subr.bf16.mxu0 %v531_v0  ;;  %414 = vmatprep.subr.bf16.mxu1 %v531_v0  ;;  %v468_v13 = vld [vmem:[%s687_s5] sm:$0xff]   ;;  %v469_v14 = vld [vmem:[%s687_s5 + $0x8] sm:$0xff]   ;;  %v470_v15 = vld [vmem:[%s687_s5 + $0x10] sm:$0xff]  }
  0x18   :  { %v471_v16 = vld [vmem:[%s687_s5 + $0x18] sm:$0xff]   ;;  %v472_v17 = vld [vmem:[%s687_s5 + $0x20] sm:$0xff]   ;;  %v473_v18 = vld [vmem:[%s687_s5 + $0x28] sm:$0xff]  }
  0x19   :  { %v360_v19 = vld [vmem:[%s684_s2] ss:$0 sm:$0xff]  ;;  %v474_v27 = vld [vmem:[%s687_s5 + $0x30] sm:$0xff]   ;;  %v475_v28 = vld [vmem:[%s687_s5 + $0x38] sm:$0xff]  }
  0x1a   :  { %407 = vmatpush3.bf16.msra.mxu0 %v459_v2  ;;  %415 = vmatpush3.bf16.msra.mxu1 %v461_v6  ;;  %v364_v29 = vld [vmem:[%s686_s4] ss:$0 sm:$0xff]  ;;  %s533_s4 = smov [#allocation5]  }
  0x1b   :  { %432 = vmatprep.subr.bf16.mxu0 %v531_v0  ;;  %416 = vmatprep.subr.bf16.mxu1 %v531_v0  ;;  %v373_v37 = vld [vmem:[%s688_s6] ss:$0 sm:$0xff]  ;;  %s351_s5 = sshll.u32 %s533_s4, 4  ;;  %s352_s5 = int_to_ptr.vmem [resolvable:$true] %s351_s5 }
  0x1c   :  { %s502_s26 = scalar_lea.vmem %s352_s5, 128  ;;  %p507_p9 = scmp.lt.s32.totalorder %s352_s5, %s352_s5 }
  0x1d   :  { %409 = vmatmul.mubr.msk.bf16.vlgmr.msra.gmra.mrb[0].mxu0 %vm67_vm1, %v43_v5  ;;  %p503_p8 = scmp.ne.s32.totalorder %s352_s5, %s502_s26  ;;  %p508_p10 = scmp.lt.s32.totalorder %s502_s26, %s502_s26 }
  0x1e   :  { %448 = vmatprep.mubr.msk.bf16.mxu0 %vm532_vm0, %v531_v0  ;;  %417 = vmatpush3.bf16.msra.mxu1 %v462_v7 }
  0x1f   :  { %418 = vmatprep.subr.bf16.mxu1 %v531_v0  ;;  %433 = vmatpush3.bf16.msra.mxu0 %v468_v13  ;;  %p509_p11 = por %p508_p10, %p507_p9 }
  0x20   :  { %434 = vmatprep.subr.bf16.mxu0 %v531_v0 }
  0x21   :  { %p510_p12 = pnand %p509_p11, %p503_p8 }
  0x22   :  { %419 = vmatpush3.bf16.msra.mxu1 %v463_v8 }
  0x23   :  { %420 = vmatprep.subr.bf16.mxu1 %v531_v0  ;;  %435 = vmatpush3.bf16.msra.mxu0 %v469_v14 }
  0x24   :  { %436 = vmatprep.subr.bf16.mxu0 %v531_v0 }
  0x26   :  { %421 = vmatpush3.bf16.msra.mxu1 %v464_v9 }
  0x27   :  { %422 = vmatprep.subr.bf16.mxu1 %v531_v0  ;;  %437 = vmatpush3.bf16.msra.mxu0 %v470_v15 }
  0x28   :  { %438 = vmatprep.subr.bf16.mxu0 %v531_v0 }
  0x2a   :  { %423 = vmatpush3.bf16.msra.mxu1 %v465_v10 }
  0x2b   :  { %424 = vmatprep.subr.bf16.mxu1 %v531_v0  ;;  %439 = vmatpush3.bf16.msra.mxu0 %v471_v16 }
  0x2c   :  { %440 = vmatprep.subr.bf16.mxu0 %v531_v0 }
  0x2e   :  { %425 = vmatpush3.bf16.msra.mxu1 %v466_v11 }
  0x2f   :  { %426 = vmatprep.subr.bf16.mxu1 %v531_v0  ;;  %441 = vmatpush3.bf16.msra.mxu0 %v472_v17 }
  0x30   :  { %442 = vmatprep.subr.bf16.mxu0 %v531_v0 }
  0x32   :  { %427 = vmatpush3.bf16.msra.mxu1 %v467_v12 }
  0x33   :  { %443 = vmatpush3.bf16.msra.mxu0 %v473_v18 }
  0x34   :  { %444 = vmatprep.subr.bf16.mxu0 %v531_v0 }
  0x37   :  { %445 = vmatpush3.bf16.msra.mxu0 %v474_v27 }
  0x38   :  { %446 = vmatprep.subr.bf16.mxu0 %v531_v0 }
  0x3b   :  { %447 = vmatpush3.bf16.msra.mxu0 %v475_v28 }
  0xf0   :  { %v105_v20 = vpop.f32.mrb[0].mxu0 }
  0xf1   :  { %v106_v21 = vadd.f32 %v360_v19, %v105_v20  ;;  %v410_v22 = vpop.f32.mrb[1].mxu0 }
  0xf2   :  { %v108_v23 = vpop.f32.mrb[2].mxu0 }
  0xf3   :  { %v111_v24 = vmax.f32 %v106_v21, 0.0  ;;  %v411_v25 = vpop.f32.mrb[3].mxu0 }
  0xf5   :  { %v112_v26 = vpack.c.bf16 %v111_v24, %v111_v24 }
  0xf7   :  { %429 = vmatmul.mubr.bf16.vlgmr.msra.gmra.mrb[0].mxu1 %v112_v26 }
 0x1ca   :  { %v218_v30 = vpop.f32.mrb[0].mxu1 }
 0x1cb   :  { %v219_v31 = vadd.f32 %v364_v29, %v218_v30  ;;  %v430_v32 = vpop.f32.mrb[1].mxu1 }
 0x1cc   :  { %v221_v33 = vpop.f32.mrb[2].mxu1 }
 0x1cd   :  { %v224_v34 = vmax.f32 %v219_v31, 0.0  ;;  %v431_v35 = vpop.f32.mrb[3].mxu1 }
 0x1cf   :  { %v225_v36 = vpack.c.bf16 %v224_v34, %v224_v34 }
 0x1d1   :  { %449 = vmatmul.mubr.bf16.vlgmr.msra.gmra.mrb[4].mxu0 %v225_v36 }
 0x2a4   :  { %v331_v38 = vpop.f32.mrb[4].mxu0 }
 0x2a5   :  { %v332_v39 = vadd.f32 %v373_v37, %v331_v38  ;;  %v450_v40 = vpop.f32.mrb[5].mxu0 }
 0x2a6   :  { %v334_v41 = vpop.f32.mrb[6].mxu0 }
 0x2a7   :  { %v382_v42 = vmul.f32 -1.442695, %v332_v39  ;;  %v451_v43 = vpop.f32.mrb[7].mxu0 }
 0x2a9   :  { %476 = vpow2.f32 %v382_v42 }
 0x2b3   :  { %v477_v44 = vpop.eup %476 }
 0x2b4   :  { %v340_v45 = vadd.f32 1.0, %v477_v44 }
 0x2b6   :  { %478 = vrcp.f32 %v340_v45 }
 0x2c0   :  { %v479_v46 = vpop.eup %478 }
 0x2c1   :  { %344 = vst.msk [vmem:[#allocation5] sm:$0xff] %vm343_vm2, %v479_v46 }
 0x2c2   :  { %513 = shalt.err (!%p510_p12)
}
 0x2c3   :  { %s514_s28 = scalar_lea.hbm %s689_s7, 128 }
 0x2c4   :  { %p515_p13 = scmp.ne.s32.totalorder %s689_s7, %s514_s28  ;;  %p518_p0 = scmp.lt.u32.totalorder %s514_s28, %s689_s7 }
 0x2c6   :  { %p520_p1 = pnand %p518_p0, %p515_p13 }
 0x2c8   :  { %523 = shalt.err (!%p520_p1)
}
 0x2c9   :  { %354 = dma.vmem_to_hbm [thread:$0]  %s352_s5, 128, %s689_s7, [#allocation4]  }
 0x2ca   :  { %526 = dma.done.wait [#allocation4], 128  }
 0x2cb   :  { %527 = vsyncadd [#allocation4], 4294967168 }
 0x2cc   :  { %358 = vsyncpa [#allocation3], 1 }
 0x2cd   :  { %359 = vsyncpa [#allocation4], 1 }

</bundles_post_ra>
